<compile_context>
chip_gen: v6e
topology: v6e:2x2x1
jax: 0.10.0
libtpu: 0.0.40
codegen_flags: <defaults>
</compile_context>

<pallas_src>
from functools import lru_cache, partial

import numpy as np

import jax
import jax.numpy as jnp
from jax.experimental import pallas as pl
from jax.experimental.pallas import tpu as pltpu


def _round_up(a: int, b: int) -> int:
    return ((a + b - 1) // b) * b


def _cdiv(a: int, b: int) -> int:
    return (a + b - 1) // b


@lru_cache(maxsize=None)
def _pool_matrix_np(hw: int, bin_num: tuple, sb_pad: int) -> np.ndarray:
    """[HW, SB_pad] pooling matrix; column (bin b, index k) has 1/m on the rows
    of that bin. Padded columns get weight 1/HW so their pooled value stays > 0."""
    cols = []
    for b in bin_num:
        m = hw // b
        eye = np.eye(b, dtype=np.float32)                 # [b, b]
        blk = np.repeat(eye, m, axis=0) * (1.0 / m)       # [HW, b]
        cols.append(blk)
    pool = np.concatenate(cols, axis=1)                   # [HW, SB]
    sb = pool.shape[1]
    if sb_pad > sb:
        pad = np.full((hw, sb_pad - sb), 1.0 / hw, dtype=np.float32)
        pool = np.concatenate([pool, pad], axis=1)        # [HW, SB_pad]
    return pool


def _gemhpp_kernel(p_ref, x_ref, pool_ref, o_ref, *, eps):
    """Fused GeM-HPP for one NC tile.

    p_ref   : SMEM (1,) f32          -- learned power p
    x_ref   : VMEM [TILE_NC, HW]     -- lane-dense activations (native dtype)
    pool_ref: VMEM [HW, SB_pad]      -- constant pooling matrix
    o_ref   : VMEM [TILE_NC, SB_pad] -- pooled output
    """
    p = p_ref[0]
    x = x_ref[...].astype(jnp.float32)                 # [TILE_NC, HW]
    x = jnp.maximum(x, eps)                            # clamp(min=eps); x > 0
    # x ** p via exp/log (EUP), safe since x >= eps > 0. Done ONCE for all bins.
    xp = jnp.exp(p * jnp.log(x))                       # [TILE_NC, HW]
    # Per-bin mean == matmul with the constant pooling matrix (MXU, full f32
    # precision: the kernel is HBM/EUP-bound so this is free and preserves the
    # large dynamic range of x**p).
    pooled = jnp.dot(xp, pool_ref[...],
                     preferred_element_type=jnp.float32,
                     precision=jax.lax.Precision.HIGHEST)  # [TILE_NC, SB_pad]
    # pooled >= 0. If a bin fully underflows (eps**p flushed to zero), log(0)
    # = -inf and exp(-inf) = 0, matching the reference's 0**(1/p) = 0.
    inv_p = 1.0 / p
    o_ref[...] = jnp.exp(jnp.log(pooled) * inv_p).astype(o_ref.dtype)


@partial(jax.jit, static_argnames=("eps", "bin_num"))
def gemhpp_pallas(x_nchw: jax.Array, p: jax.Array, *, eps: float, bin_num) -> jax.Array:
    """x: [n, c, h, w] -> [n, c, sum(bin_num)]  (all bins fused in one call)."""
    n, c, h, w = x_nchw.shape
    hw = h * w
    for b in bin_num:
        assert hw % b == 0, f"h*w={hw} not divisible by bin {b}"

    NC = n * c
    itemsize = x_nchw.dtype.itemsize
    SB = int(sum(bin_num))
    SB_pad = _round_up(SB, 128)

    x2d = x_nchw.reshape(NC, hw)                          # lane-dense glue reshape
    pool = jnp.asarray(_pool_matrix_np(hw, tuple(bin_num), SB_pad))  # const-folds

    # ---- adaptive tile selection on the NC axis (multiples of 8 sublanes) ----
    NC_r8 = _round_up(NC, 8)
    TARGET_TILE_BYTES = 4 * 1024 * 1024                   # ~4 MiB of x per block
    tile = _round_up(max(TARGET_TILE_BYTES // max(hw * itemsize, 1), 1), 8)
    tile = min(tile, NC_r8)
    # >= 4 grid steps when NC allows: v7x shards the parallel axis across its
    # 2 TensorCores and double-buffers; v5e/v6e still want >= 2 for DMA overlap.
    tile = min(tile, max(_round_up(_cdiv(NC, 4), 8), 8))

    def _vmem_bytes(t: int) -> int:
        return (2 * t * hw * itemsize        # double-buffered x input blocks
                + 2 * t * hw * 4             # f32 cast + xp temporaries
                + 2 * t * SB_pad * 4         # output blocks (f32 upper bound)
                + hw * SB_pad * 4)           # pooling matrix

    VMEM_BUDGET = 10 * 1024 * 1024           # fits v5e 16 MiB scoped / v7x 64 MiB
    while tile > 8 and _vmem_bytes(tile) > VMEM_BUDGET:
        tile -= 8
    TILE_NC = tile
    grid = (_cdiv(NC, TILE_NC),)             # partial final block: no jnp.pad copy

    vmem_limit = min(32 * 1024 * 1024,
                     max(2 * _vmem_bytes(TILE_NC), 16 * 1024 * 1024))

    cost = pl.CostEstimate(
        flops=2 * NC * hw * SB_pad,                      # pooling matmul
        transcendentals=2 * NC * (hw + SB_pad),          # log+exp in, log+exp out
        bytes_accessed=(x2d.size * itemsize
                        + pool.size * 4
                        + NC * SB_pad * itemsize),
    )

    out = pl.pallas_call(
        partial(_gemhpp_kernel, eps=eps),
        out_shape=jax.ShapeDtypeStruct((NC, SB_pad), x_nchw.dtype),
        grid=grid,
        in_specs=[
            pl.BlockSpec(memory_space=pltpu.MemorySpace.SMEM),      # p scalar
            pl.BlockSpec((TILE_NC, hw), lambda i: (i, 0)),          # x tile
            pl.BlockSpec((hw, SB_pad), lambda i: (0, 0)),           # pooling matrix
        ],
        out_specs=pl.BlockSpec((TILE_NC, SB_pad), lambda i: (i, 0)),
        compiler_params=pltpu.CompilerParams(
            dimension_semantics=("parallel",),
            vmem_limit_bytes=vmem_limit),
        cost_estimate=cost,
    )(p, x2d, pool)

    return out[:, :SB].reshape(n, c, SB)                 # fused under jit


class GeMHPP:
    """JAX/Pallas port of OpenGait GeMHPP (forward only)."""

    def __init__(self, bin_num=(64,), p=6.5, eps=1e-6):
        self.bin_num = tuple(bin_num)
        # deterministic parameter init, same as torch.ones(1) * p
        self.p = jnp.ones((1,), dtype=jnp.float32) * p
        self.eps = float(eps)

    def __call__(self, x: jax.Array) -> jax.Array:
        """x: [n, c, h, w] -> [n, c, sum(bin_num)]"""
        return gemhpp_pallas(x, self.p, eps=self.eps, bin_num=self.bin_num)


def _reference(x, p, eps, bin_num):
    # pure-jnp reference mirroring the PyTorch module
    n, c, h, w = x.shape
    outs = []
    for b in bin_num:
        z = x.reshape(n, c, b, -1)
        z = jnp.maximum(z, eps) ** p
        z = jnp.mean(z, axis=-1) ** (1.0 / p)
        outs.append(z)
    return jnp.concatenate(outs, axis=-1)


if __name__ == "__main__":
    key = jax.random.PRNGKey(0)
    # small shapes consistent with the module: n=2, c=4, h=16, w=16
    x = jax.random.normal(key, (2, 4, 16, 16), dtype=jnp.float32)

    model = GeMHPP(bin_num=(64,), p=6.5, eps=1e-6)
    out = model(x)
    out = jax.block_until_ready(out)

    assert out.shape == (2, 4, 64), out.shape

    ref = _reference(x, float(model.p[0]), model.eps, model.bin_num)
    assert jnp.allclose(out, ref, rtol=1e-4, atol=1e-5), "mismatch vs reference"

    print("KERNEL_OK")
</pallas_src>

<mosaic_0001>
module attributes {stable_mosaic.version = 11 : i64} {
  func.func @_gemhpp_kernel(%arg0: i32, %arg1: memref<1xf32, #tpu.memory_space<smem>>, %arg2: memref<8x256xf32, #tpu.memory_space<vmem>>, %arg3: memref<256x128xf32, #tpu.memory_space<vmem>>, %arg4: memref<8x128xf32, #tpu.memory_space<vmem>>) attributes {dimension_semantics = [#tpu.dimension_semantics<parallel>], iteration_bounds = array<i64: 1>, scalar_prefetch = 0 : i64, scratch_operands = 0 : i64, tpu.core_type = #tpu.core_type<tc>, window_params = [{transform_indices = @transform_0, window_bounds = array<i64: 1>}, {transform_indices = @transform_1, window_bounds = array<i64: 8, 256>}, {pipeline_mode = #tpu.pipeline_mode<synchronous>, transform_indices = @transform_2, window_bounds = array<i64: 256, 128>}, {transform_indices = @transform_3, window_bounds = array<i64: 8, 128>}]} {
    %c0 = arith.constant 0 : index
    %0 = memref.load %arg1[%c0] : memref<1xf32, #tpu.memory_space<smem>>
    %c0_0 = arith.constant 0 : index
    %c0_1 = arith.constant 0 : index
    %1 = vector.load %arg2[%c0_0, %c0_1] : memref<8x256xf32, #tpu.memory_space<vmem>>, vector<8x256xf32>
    %cst = arith.constant 9.99999997E-7 : f32
    %2 = vector.broadcast %cst : f32 to vector<8x256xf32>
    %3 = arith.maximumf %1, %2 : vector<8x256xf32>
    %4 = math.log %3 : vector<8x256xf32>
    %5 = vector.broadcast %0 : f32 to vector<8x256xf32>
    %6 = arith.mulf %5, %4 : vector<8x256xf32>
    %7 = math.exp %6 : vector<8x256xf32>
    %c0_2 = arith.constant 0 : index
    %c0_3 = arith.constant 0 : index
    %8 = vector.load %arg3[%c0_2, %c0_3] : memref<256x128xf32, #tpu.memory_space<vmem>>, vector<256x128xf32>
    %cst_4 = arith.constant dense<0.000000e+00> : vector<8x128xf32>
    %9 = tpu.matmul %7, %8, %cst_4 {dimension_numbers = #tpu.dot_dimension_numbers<[1], [0], [0], [1], [0, 0, 1, 1], [], []>, precision = #tpu.contract_precision<fp32>} : vector<8x256xf32>, vector<256x128xf32>, vector<8x128xf32> -> vector<8x128xf32>
    %cst_5 = arith.constant 1.000000e+00 : f32
    %10 = arith.divf %cst_5, %0 : f32
    %11 = math.log %9 : vector<8x128xf32>
    %12 = vector.broadcast %10 : f32 to vector<8x128xf32>
    %13 = arith.mulf %11, %12 : vector<8x128xf32>
    %14 = math.exp %13 : vector<8x128xf32>
    %c0_6 = arith.constant 0 : index
    %c0_7 = arith.constant 0 : index
    %15 = vector.load %arg4[%c0_6, %c0_7] : memref<8x128xf32, #tpu.memory_space<vmem>>, vector<8x128xf32>
    tpu.vector_store %arg4[%c0_6, %c0_7], %14 {strides = array<i32>} : memref<8x128xf32, #tpu.memory_space<vmem>>, vector<8x128xf32>,
    return
  }
  func.func @transform_0(%arg0: i32) -> i32 {
    %c0_i32 = arith.constant 0 : i32
    %c0_i32_0 = arith.constant 0 : i32
    return %c0_i32 : i32
  }
  func.func @transform_1(%arg0: i32) -> (i32, i32) {
    %c0_i32 = arith.constant 0 : i32
    %c0_i32_0 = arith.constant 0 : i32
    return %arg0, %c0_i32 : i32, i32
  }
  func.func @transform_2(%arg0: i32) -> (i32, i32) {
    %c0_i32 = arith.constant 0 : i32
    %c0_i32_0 = arith.constant 0 : i32
    %c0_i32_1 = arith.constant 0 : i32
    return %c0_i32, %c0_i32_0 : i32, i32
  }
  func.func @transform_3(%arg0: i32) -> (i32, i32) {
    %c0_i32 = arith.constant 0 : i32
    %c0_i32_0 = arith.constant 0 : i32
    return %arg0, %c0_i32 : i32, i32
  }
}

</mosaic_0001>

<bundles_post_ra>
// kernel: gemhpp_pallas.1
= control target key start
LH: loop header
LB: loop body
LE: loop exit
PB: predicated region body
PF: predicated region fallthrough
CT: control target
= control target key end

     0   :  { %9 = vsyncpa [#allocation4], 0  ;;  %s1789_s0 = inlined_call_operand.<no memory space> [shape: f32[1], index: 0, kind: input, shape index: {}]   ;;  %s1790_s1 = inlined_call_operand.vmem [shape: f32[8,256], index: 1, kind: input, shape index: {}]   ;;  %s1791_s2 = inlined_call_operand.hbm [shape: f32[256,128], index: 2, kind: input, shape index: {}]   ;;  %s1792_s3 = inlined_call_operand.hbm [shape: f32[8,128], index: 3, kind: output, shape index: {}]  }
   0x1   :  { %10 = vsyncpa [#allocation5], 0  ;;  %s1239_s12 = smov [#allocation3]  }
   0x2   :  { %s20_s13 = sshll.u32 %s1239_s12, 4  ;;  %s21_s13 = int_to_ptr.vmem [resolvable:$true] %s20_s13 }
   0x3   :  { %s1203_s14 = scalar_lea.vmem %s21_s13, 4096  ;;  %p1208_p1 = scmp.lt.s32.totalorder %s21_s13, %s21_s13 }
   0x4   :  { %p1204_p0 = scmp.ne.s32.totalorder %s21_s13, %s1203_s14  ;;  %p1209_p2 = scmp.lt.s32.totalorder %s1203_s14, %s1203_s14 }
   0x6   :  { %p1210_p3 = por %p1209_p2, %p1208_p1 }
   0x8   :  { %p1211_p4 = pnand %p1210_p3, %p1204_p0 }
   0xa   :  { %1214 = shalt.err (!%p1211_p4)
}
   0xb   :  { %s1240_s15 = smov 128   ;;  %s1241_s16 = smov 8  }
   0xc   :  { %26 = dma.hbm_to_vmem [thread:$0]  %s1791_s2, 4096, %s21_s13, [#allocation4], %s1240_s15, %s1240_s15, %s1241_s16  }
   0xd   :  { %1235 = dma.done.wait [#allocation4], 4096  }
   0xe   :  { %1236 = vsyncadd [#allocation4], 4294963200  ;;  %v77_v0 = vld [vmem:[#allocation3 + $0xf8] sm:$0xff]  ;;  %v76_v2 = vld [vmem:[#allocation3 + $0xf0] sm:$0xff]  ;;  %s1242_s23 = smov [#allocation6]  }
   0xf   :  { %v61_v1 = vld [vmem:[#allocation3 + $0x78] sm:$0xff]  ;;  %v1266_v3 = vand.u32 4294901760, %v77_v0  ;;  %v1270_v5 = vand.u32 4294901760, %v76_v2  ;;  %v60_v6 = vld [vmem:[#allocation3 + $0x70] sm:$0xff]  ;;  %v75_v7 = vld [vmem:[#allocation3 + $0xe8] sm:$0xff]  ;;  %s956_s24 = sshll.u32 %s1242_s23, 4  ;;  %s957_s24 = int_to_ptr.vmem [resolvable:$true] %s956_s24 }
  0x10   :  { %v1268_v4 = vand.u32 4294901760, %v61_v1  ;;  %v59_v8 = vld [vmem:[#allocation3 + $0x68] sm:$0xff]  ;;  %v1272_v9 = vand.u32 4294901760, %v60_v6  ;;  %v1274_v10 = vand.u32 4294901760, %v75_v7  ;;  %v74_v12 = vld [vmem:[#allocation3 + $0xe0] sm:$0xff]  ;;  %v73_v38 = vld [vmem:[#allocation3 + $0xd8] sm:$0xff]  ;;  %p1220_p6 = scmp.lt.s32.totalorder %s957_s24, %s957_s24 }
  0x11   :  { %v1276_v11 = vand.u32 4294901760, %v59_v8  ;;  %v58_v13 = vld [vmem:[#allocation3 + $0x60] sm:$0xff]  ;;  %965 = vmatprep.subr.mxu0 %v1266_v3  ;;  %v1280_v14 = vsub.f32 %v77_v0, %v1266_v3  ;;  %v1286_v16 = vsub.f32 %v76_v2, %v1270_v5  ;;  %v1288_v17 = vand.u32 4294901760, %v74_v12  ;;  %v57_v39 = vld [vmem:[#allocation3 + $0x58] sm:$0xff]  ;;  %v72_v40 = vld [vmem:[#allocation3 + $0xd0] sm:$0xff]  ;;  %s1215_s25 = scalar_lea.vmem %s957_s24, 128 }
  0x12   :  { %v1283_v15 = vsub.f32 %v61_v1, %v1268_v4  ;;  %966 = vmatpush3.msra.mxu0 %v1268_v4  ;;  %v1292_v18 = vsub.f32 %v60_v6, %v1272_v9  ;;  %v1295_v19 = vsub.f32 %v75_v7, %v1274_v10  ;;  %v1300_v21 = vand.u32 4294901760, %v58_v13  ;;  %v56_v45 = vld [vmem:[#allocation3 + $0x50] sm:$0xff]  ;;  %v71_v46 = vld [vmem:[#allocation3 + $0xc8] sm:$0xff]  ;;  %v70_v52 = vld [vmem:[#allocation3 + $0xc0] sm:$0xff]  ;;  %p1216_p5 = scmp.ne.s32.totalorder %s957_s24, %s1215_s25  ;;  %p1221_p7 = scmp.lt.s32.totalorder %s1215_s25, %s1215_s25 }
  0x13   :  { %v1298_v20 = vsub.f32 %v59_v8, %v1276_v11  ;;  %v1811_v22 = vand.u32 4294901760, %v1280_v14  ;;  %967 = vmatprep.subr.mxu0 %v1270_v5  ;;  %v1809_v24 = vand.u32 4294901760, %v1286_v16  ;;  %v1307_v25 = vsub.f32 %v74_v12, %v1288_v17  ;;  %v55_v47 = vld [vmem:[#allocation3 + $0x48] sm:$0xff]  ;;  %v54_v57 = vld [vmem:[#allocation3 + $0x40] sm:$0xff] }
  0x14   :  { %v1810_v23 = vand.u32 4294901760, %v1283_v15  ;;  %968 = vmatpush3.msra.mxu0 %v1272_v9  ;;  %v1805_v26 = vand.u32 4294901760, %v1292_v18  ;;  %v1804_v27 = vand.u32 4294901760, %v1295_v19  ;;  %v1314_v29 = vsub.f32 %v58_v13, %v1300_v21  ;;  %p1222_p8 = por %p1221_p7, %p1220_p6 }
  0x15   :  { %v1803_v28 = vand.u32 4294901760, %v1298_v20  ;;  %v306_v30 = vsub.f32 %v1280_v14, %v1811_v22  ;;  %v313_v32 = vsub.f32 %v1286_v16, %v1809_v24  ;;  %969 = vmatprep.subr.mxu0 %v1274_v10  ;;  %v1802_v33 = vand.u32 4294901760, %v1307_v25  ;;  %v49_v24 = vld [vmem:[#allocation3 + $0x18] sm:$0xff] }
  0x16   :  { %v194_v31 = vsub.f32 %v1283_v15, %v1810_v23  ;;  %v201_v34 = vsub.f32 %v1292_v18, %v1805_v26  ;;  %v320_v35 = vsub.f32 %v1295_v19, %v1804_v27  ;;  %970 = vmatpush3.msra.mxu0 %v1276_v11  ;;  %v1800_v37 = vand.u32 4294901760, %v1314_v29  ;;  %v64_v23 = vld [vmem:[#allocation3 + $0x90] sm:$0xff]  ;;  %p1223_p9 = pnand %p1222_p8, %p1216_p5 }
  0x17   :  { %v208_v36 = vsub.f32 %v1298_v20, %v1803_v28  ;;  %v307_v41 = vand.u32 4294901760, %v306_v30  ;;  %v314_v43 = vand.u32 4294901760, %v313_v32  ;;  %971 = vmatprep.subr.mxu0 %v1288_v17  ;;  %v327_v44 = vsub.f32 %v1307_v25, %v1802_v33 }
  0x18   :  { %v195_v42 = vand.u32 4294901760, %v194_v31  ;;  %v202_v48 = vand.u32 4294901760, %v201_v34  ;;  %v321_v49 = vand.u32 4294901760, %v320_v35  ;;  %972 = vmatpush3.msra.mxu0 %v1300_v21  ;;  %v215_v51 = vsub.f32 %v1314_v29, %v1800_v37 }
  0x19   :  { %v209_v50 = vand.u32 4294901760, %v208_v36  ;;  %1000 = vmatprep.subr.mxu1 %v307_v41  ;;  %v328_v53 = vand.u32 4294901760, %v327_v44  ;;  %v1346_v54 = vand.u32 4294901760, %v73_v38  ;;  %v1348_v55 = vand.u32 4294901760, %v57_v39 }
  0x1a   :  { %v1350_v56 = vand.u32 4294901760, %v72_v40  ;;  %1001 = vmatpush3.msra.mxu1 %v195_v42  ;;  %v216_v58 = vand.u32 4294901760, %v215_v51  ;;  %v1352_v59 = vand.u32 4294901760, %v56_v45  ;;  %v1354_v60 = vand.u32 4294901760, %v71_v46 }
  0x1b   :  { %v1356_v61 = vand.u32 4294901760, %v55_v47  ;;  %1002 = vmatprep.subr.mxu1 %v314_v43  ;;  %973 = vmatprep.subr.mxu0 %v1346_v54  ;;  %v1360_v62 = vsub.f32 %v73_v38, %v1346_v54  ;;  %v1363_v63 = vsub.f32 %v57_v39, %v1348_v55  ;;  %v1368_v1 = vand.u32 4294901760, %v70_v52 }
  0x1c   :  { %v1366_v0 = vsub.f32 %v72_v40, %v1350_v56  ;;  %1003 = vmatpush3.msra.mxu1 %v202_v48  ;;  %974 = vmatpush3.msra.mxu0 %v1348_v55  ;;  %v1372_v2 = vsub.f32 %v56_v45, %v1352_v59  ;;  %v1375_v6 = vsub.f32 %v71_v46, %v1354_v60  ;;  %v1380_v8 = vand.u32 4294901760, %v54_v57  ;;  %v69_v46 = vld [vmem:[#allocation3 + $0xb8] sm:$0xff]  ;;  %v68_v48 = vld [vmem:[#allocation3 + $0xb0] sm:$0xff] }
  0x1d   :  { %v1378_v7 = vsub.f32 %v55_v47, %v1356_v61  ;;  %1004 = vmatprep.subr.mxu1 %v321_v49  ;;  %v1799_v12 = vand.u32 4294901760, %v1360_v62  ;;  %v1797_v13 = vand.u32 4294901760, %v1363_v63  ;;  %975 = vmatprep.subr.mxu0 %v1350_v56  ;;  %v1387_v31 = vsub.f32 %v70_v52, %v1368_v1  ;;  %v53_v47 = vld [vmem:[#allocation3 + $0x38] sm:$0xff] }
  0x1e   :  { %v1796_v30 = vand.u32 4294901760, %v1366_v0  ;;  %1005 = vmatpush3.msra.mxu1 %v209_v50  ;;  %976 = vmatpush3.msra.mxu0 %v1352_v59  ;;  %v1794_v32 = vand.u32 4294901760, %v1372_v2  ;;  %v1793_v34 = vand.u32 4294901760, %v1375_v6  ;;  %v1394_v36 = vsub.f32 %v54_v57, %v1380_v8  ;;  %v67_v57 = vld [vmem:[#allocation3 + $0xa8] sm:$0xff] }
  0x1f   :  { %v1795_v35 = vand.u32 4294901760, %v1378_v7  ;;  %1006 = vmatprep.subr.mxu1 %v328_v53  ;;  %v334_v38 = vsub.f32 %v1360_v62, %v1799_v12  ;;  %v222_v39 = vsub.f32 %v1363_v63, %v1797_v13  ;;  %977 = vmatprep.subr.mxu0 %v1354_v60  ;;  %v1798_v41 = vand.u32 4294901760, %v1387_v31  ;;  %v52_v53 = vld [vmem:[#allocation3 + $0x30] sm:$0xff]  ;;  %v50_v12 = vld [vmem:[#allocation3 + $0x20] sm:$0xff] }
  0x20   :  { %1861 = vst [vmem:[#allocation9_spill] sm:$0xff] %v1394_v36  ;;  %v341_v40 = vsub.f32 %v1366_v0, %v1796_v30  ;;  %1007 = vmatpush3.msra.mxu1 %v216_v58  ;;  %v229_v42 = vsub.f32 %v1372_v2, %v1794_v32  ;;  %v348_v43 = vsub.f32 %v1375_v6, %v1793_v34  ;;  %v1801_v45 = vand.u32 4294901760, %v1394_v36  ;;  %v51_v58 = vld [vmem:[#allocation3 + $0x28] sm:$0xff] }
  0x21   :  { %978 = vmatpush3.msra.mxu0 %v1356_v61  ;;  %v236_v44 = vsub.f32 %v1378_v7, %v1795_v35  ;;  %v335_v49 = vand.u32 4294901760, %v334_v38  ;;  %v223_v50 = vand.u32 4294901760, %v222_v39  ;;  %v355_v52 = vsub.f32 %v1387_v31, %v1798_v41  ;;  %v66_v39 = vld [vmem:[#allocation3 + $0xa0] sm:$0xff] }
  0x22   :  { %v342_v51 = vand.u32 4294901760, %v341_v40  ;;  %979 = vmatprep.subr.mxu0 %v1368_v1  ;;  %v230_v34 = vand.u32 4294901760, %v229_v42  ;;  %v349_v32 = vand.u32 4294901760, %v348_v43  ;;  %v243_v38 = vsub.f32 %v1394_v36, %v1801_v45 }
  0x23   :  { %v237_v35 = vand.u32 4294901760, %v236_v44  ;;  %980 = vmatpush3.msra.mxu0 %v1380_v8  ;;  %1008 = vmatprep.subr.mxu1 %v335_v49  ;;  %v356_v40 = vand.u32 4294901760, %v355_v52  ;;  %v1426_v30 = vand.u32 4294901760, %v69_v46  ;;  %v1428_v13 = vand.u32 4294901760, %v53_v47 }
  0x24   :  { %v1430_v41 = vand.u32 4294901760, %v68_v48  ;;  %1009 = vmatpush3.msra.mxu1 %v223_v50  ;;  %v244_v42 = vand.u32 4294901760, %v243_v38  ;;  %v1432_v43 = vand.u32 4294901760, %v52_v53  ;;  %v1434_v44 = vand.u32 4294901760, %v67_v57 }
  0x25   :  { %v1436_v37 = vand.u32 4294901760, %v51_v58  ;;  %1010 = vmatprep.subr.mxu1 %v342_v51  ;;  %981 = vmatprep.subr.mxu0 %v1426_v30  ;;  %v1440_v49 = vsub.f32 %v69_v46, %v1426_v30  ;;  %v1443_v52 = vsub.f32 %v53_v47, %v1428_v13  ;;  %v1448_v50 = vand.u32 4294901760, %v66_v39 }
  0x26   :  { %v1446_v45 = vsub.f32 %v68_v48, %v1430_v41  ;;  %1011 = vmatpush3.msra.mxu1 %v230_v34  ;;  %982 = vmatpush3.msra.mxu0 %v1428_v13  ;;  %v1452_v38 = vsub.f32 %v52_v53, %v1432_v43  ;;  %v1455_v51 = vsub.f32 %v67_v57, %v1434_v44  ;;  %v1460_v33 = vand.u32 4294901760, %v50_v12 }
  0x27   :  { %1862 = vst [vmem:[#allocation10_spill] sm:$0xff] %v1440_v49  ;;  %1863 = vst [vmem:[#allocation11_spill] sm:$0xff] %v1443_v52  ;;  %v1458_v46 = vsub.f32 %v51_v58, %v1436_v37  ;;  %1012 = vmatprep.subr.mxu1 %v349_v32  ;;  %v1808_v47 = vand.u32 4294901760, %v1440_v49  ;;  %v1806_v48 = vand.u32 4294901760, %v1443_v52  ;;  %983 = vmatprep.subr.mxu0 %v1430_v41  ;;  %v1508_v36 = vand.u32 4294901760, %v49_v24 }
  0x28   :  { %1864 = vst [vmem:[#allocation12_spill] sm:$0xff] %v1446_v45  ;;  %1865 = vst [vmem:[#allocation13_spill] sm:$0xff] %v1452_v38  ;;  %v1807_v34 = vand.u32 4294901760, %v1446_v45  ;;  %v1467_v53 = vsub.f32 %v66_v39, %v1448_v50  ;;  %1013 = vmatpush3.msra.mxu1 %v237_v35  ;;  %984 = vmatpush3.msra.mxu0 %v1432_v43  ;;  %v1812_v57 = vand.u32 4294901760, %v1452_v38  ;;  %v1813_v58 = vand.u32 4294901760, %v1455_v51 }
  0x29   :  { %1866 = vst [vmem:[#allocation14_spill] sm:$0xff] %v1455_v51  ;;  %1867 = vst [vmem:[#allocation15_spill] sm:$0xff] %v1458_v46  ;;  %v1824_v32 = vand.u32 4294901760, %v1458_v46  ;;  %v1474_v28 = vsub.f32 %v50_v12, %v1460_v33  ;;  %1014 = vmatprep.subr.mxu1 %v356_v40  ;;  %v362_v27 = vsub.f32 %v1440_v49, %v1808_v47  ;;  %985 = vmatprep.subr.mxu0 %v1434_v44  ;;  %v65_v47 = vld [vmem:[#allocation3 + $0x98] sm:$0xff] }
  0x2a   :  { %1868 = vst [vmem:[#allocation16_spill] sm:$0xff] %v1460_v33  ;;  %1869 = vst [vmem:[#allocation17_spill] sm:$0xff] %v1467_v53  ;;  %v250_v35 = vsub.f32 %v1443_v52, %v1806_v48  ;;  %v369_v39 = vsub.f32 %v1446_v45, %v1807_v34  ;;  %1015 = vmatpush3.msra.mxu1 %v244_v42  ;;  %v257_v12 = vsub.f32 %v1452_v38, %v1812_v57  ;;  %v63_v38 = vld [vmem:[#allocation3 + $0x88] sm:$0xff] }
  0x2b   :  { %1870 = vst [vmem:[#allocation18_spill] sm:$0xff] %v1474_v28  ;;  %v376_v40 = vsub.f32 %v1455_v51, %v1813_v58  ;;  %986 = vmatpush3.msra.mxu0 %v1436_v37  ;;  %v264_v48 = vsub.f32 %v1458_v46, %v1824_v32  ;;  %v1833_v34 = vand.u32 4294901760, %v1474_v28  ;;  %v363_v42 = vand.u32 4294901760, %v362_v27  ;;  %v48_v51 = vld [vmem:[#allocation3 + $0x10] sm:$0xff]  ;;  %v47_v45 = vld [vmem:[#allocation3 + $0x8] sm:$0xff] }
  0x2c   :  { %v251_v22 = vand.u32 4294901760, %v250_v35  ;;  %v370_v26 = vand.u32 4294901760, %v369_v39  ;;  %987 = vmatprep.subr.mxu0 %v1448_v50  ;;  %v1871_v57 = vand.u32 4294901760, %v1467_v53  ;;  %v258_v52 = vand.u32 4294901760, %v257_v12  ;;  %v62_v35 = vld [vmem:[#allocation3 + $0x80] sm:$0xff] }
  0x2d   :  { %v377_v49 = vand.u32 4294901760, %v376_v40  ;;  %v265_v32 = vand.u32 4294901760, %v264_v48  ;;  %988 = vmatpush3.msra.mxu0 %v1460_v33  ;;  %v271_v27 = vsub.f32 %v1474_v28, %v1833_v34  ;;  %1016 = vmatprep.subr.mxu1 %v363_v42  ;;  %v1506_v46 = vand.u32 4294901760, %v65_v47 }
  0x2e   :  { %v383_v58 = vsub.f32 %v1467_v53, %v1871_v57  ;;  %v1510_v57 = vand.u32 4294901760, %v64_v23  ;;  %v46_v53 = vld [vmem:[#allocation3] sm:$0xff]  ;;  %1017 = vmatpush3.msra.mxu1 %v251_v22  ;;  %v1512_v40 = vand.u32 4294901760, %v48_v51  ;;  %v1514_v48 = vand.u32 4294901760, %v63_v38 }
  0x2f   :  { %v272_v12 = vand.u32 4294901760, %v271_v27  ;;  %v1516_v33 = vand.u32 4294901760, %v47_v45  ;;  %1018 = vmatprep.subr.mxu1 %v370_v26  ;;  %989 = vmatprep.subr.mxu0 %v1506_v46  ;;  %v1523_v42 = vsub.f32 %v49_v24, %v1508_v36  ;;  %v1528_v22 = vand.u32 4294901760, %v62_v35 }
  0x30   :  { %v384_v39 = vand.u32 4294901760, %v383_v58  ;;  %1872 = vst [vmem:[#allocation19_spill] sm:$0xff] %v1512_v40  ;;  %v1520_v58 = vsub.f32 %v65_v47, %v1506_v46  ;;  %v1526_v34 = vsub.f32 %v64_v23, %v1510_v57  ;;  %1019 = vmatpush3.msra.mxu1 %v258_v52  ;;  %990 = vmatpush3.msra.mxu0 %v1508_v36  ;;  %v1540_v28 = vand.u32 4294901760, %v46_v53 }
  0x31   :  { %1873 = vst [vmem:[#allocation20_spill] sm:$0xff] %v1516_v33  ;;  %1875 = vst [vmem:[#allocation22_spill] sm:$0xff] %v1523_v42  ;;  %v1532_v27 = vsub.f32 %v48_v51, %v1512_v40  ;;  %v1535_v26 = vsub.f32 %v63_v38, %v1514_v48  ;;  %v1538_v47 = vsub.f32 %v47_v45, %v1516_v33  ;;  %1020 = vmatprep.subr.mxu1 %v377_v49 }
  0x32   :  { %1874 = vst [vmem:[#allocation21_spill] sm:$0xff] %v1520_v58  ;;  %1876 = vst [vmem:[#allocation23_spill] sm:$0xff] %v1526_v34  ;;  %991 = vmatprep.subr.mxu0 %v1510_v57  ;;  %v1547_v51 = vsub.f32 %v62_v35, %v1528_v22  ;;  %1021 = vmatpush3.msra.mxu1 %v265_v32  ;;  %v1554_v23 = vsub.f32 %v46_v53, %v1540_v28  ;;  %v1881_v24 = vand.u32 4294901760, %v1520_v58 }
  0x33   :  { %1877 = vst [vmem:[#allocation24_spill] sm:$0xff] %v1528_v22  ;;  %1878 = vst [vmem:[#allocation25_spill] sm:$0xff] %v1532_v27  ;;  %992 = vmatpush3.msra.mxu0 %v1512_v40  ;;  %v1844_v38 = vand.u32 4294901760, %v1535_v26  ;;  %1022 = vmatprep.subr.mxu1 %v384_v39  ;;  %v1882_v35 = vand.u32 4294901760, %v1523_v42  ;;  %v1883_v40 = vand.u32 4294901760, %v1526_v34  ;;  %v1884_v53 = vand.u32 4294901760, %v1532_v27 }
  0x34   :  { %1879 = vst [vmem:[#allocation26_spill] sm:$0xff] %v1535_v26  ;;  %1880 = vst [vmem:[#allocation27_spill] sm:$0xff] %v1538_v47  ;;  %v390_v52 = vsub.f32 %v1520_v58, %v1881_v24  ;;  %993 = vmatprep.subr.mxu0 %v1514_v48  ;;  %1023 = vmatpush3.msra.mxu1 %v272_v12  ;;  %v32_v12 = vld [vmem:[%s1790_s1 + $0x8] sm:$0xff] }
  0x35   :  { %v278_v32 = vsub.f32 %v1523_v42, %v1882_v35  ;;  %v397_v45 = vsub.f32 %v1526_v34, %v1883_v40  ;;  %v285_v39 = vsub.f32 %v1532_v27, %v1884_v53  ;;  %v404_v24 = vsub.f32 %v1535_v26, %v1844_v38  ;;  %994 = vmatpush3.msra.mxu0 %v1516_v33  ;;  %v31_v53 = vld [vmem:[%s1790_s1] sm:$0xff] }
  0x36   :  { %v1885_v35 = vand.u32 4294901760, %v1538_v47  ;;  %v1853_v40 = vand.u32 4294901760, %v1554_v23  ;;  %v391_v49 = vand.u32 4294901760, %v390_v52  ;;  %995 = vmatprep.subr.mxu0 %v1528_v22  ;;  %v1886_v38 = vand.u32 4294901760, %v1547_v51 }
  0x37   :  { %v279_v27 = vand.u32 4294901760, %v278_v32  ;;  %v398_v34 = vand.u32 4294901760, %v397_v45  ;;  %996 = vmatpush3.msra.mxu0 %v1540_v28  ;;  %v405_v58 = vand.u32 4294901760, %v404_v24  ;;  %v34_v33 = vmax.f32 %v32_v12, 1e-06 }
  0x38   :  { %v292_v42 = vsub.f32 %v1538_v47, %v1885_v35  ;;  %v411_v26 = vsub.f32 %v1547_v51, %v1886_v38  ;;  %v286_v35 = vand.u32 4294901760, %v285_v39  ;;  %v299_v47 = vsub.f32 %v1554_v23, %v1853_v40  ;;  %1024 = vmatprep.subr.mxu1 %v391_v49  ;;  %1035 = vmatprep.subr.mxu0 %v1280_v14  ;;  %v1901_v40 = vld [vmem:[#allocation18_spill] sm:$0xff] }
  0x39   :  { %v33_v52 = vmax.f32 %v31_v53, 1e-06  ;;  %1025 = vmatpush3.msra.mxu1 %v279_v27  ;;  %1181 = vlog2.f32 %v34_v33  ;;  %v1597_v39 = vstv %s1789_s0 }
  0x3a   :  { %v293_v45 = vand.u32 4294901760, %v292_v42  ;;  %1026 = vmatprep.subr.mxu1 %v398_v34  ;;  %v412_v32 = vand.u32 4294901760, %v411_v26  ;;  %v300_v38 = vand.u32 4294901760, %v299_v47  ;;  %1887 = vst [vmem:[#allocation28_spill] sm:$0xff] %v1597_v39 }
  0x3b   :  { %1027 = vmatpush3.msra.mxu1 %v286_v35  ;;  %1183 = vlog2.f32 %v33_v52 }
  0x3c   :  { %1028 = vmatprep.subr.mxu1 %v405_v58 }
  0x3d   :  { %1029 = vmatpush3.msra.mxu1 %v293_v45 }
  0x3e   :  { %1030 = vmatprep.subr.mxu1 %v412_v32 }
  0x3f   :  { %1031 = vmatpush3.msra.mxu1 %v300_v38 }
  0x40   :  { %1070 = vmatprep.subr.mxu1 %v1266_v3 }
  0x46   :  { %v1182_v49 = vpop.eup %1181 }
  0x47   :  { %v38_v42 = vmul.f32 0.6931472, %v1182_v49 }
  0x48   :  { %v1184_v27 = vpop.eup %1183 }
  0x49   :  { %v36_v34 = vmul.f32 0.6931472, %v1184_v27  ;;  %v41_v33 = vmul.f32 %v1597_v39, %v38_v42 }
  0x4b   :  { %v40_v26 = vmul.f32 %v1597_v39, %v36_v34  ;;  %v44_v47 = vmul.f32 1.442695, %v41_v33  ;;  %v1890_v33 = vld [vmem:[#allocation9_spill] sm:$0xff]  ;;  %v1903_v39 = vld [vmem:[#allocation22_spill] sm:$0xff] }
  0x4d   :  { %v42_v58 = vmul.f32 1.442695, %v40_v26  ;;  %1185 = vpow2.f32 %v44_v47  ;;  %v1891_v26 = vld [vmem:[#allocation16_spill] sm:$0xff]  ;;  %v1892_v47 = vld [vmem:[#allocation10_spill] sm:$0xff] }
  0x4f   :  { %1187 = vpow2.f32 %v42_v58  ;;  %v1893_v58 = vld [vmem:[#allocation11_spill] sm:$0xff] }
  0x5a   :  { %v1186_v24 = vpop.eup %1185 }
  0x5b   :  { %v1601_v53 = vand.u32 4294901760, %v1186_v24 }
  0x5c   :  { %v1188_v12 = vpop.eup %1187 }
  0x5d   :  { %1888 = vst [vmem:[#allocation29_spill] sm:$0xff] %v1601_v53  ;;  %v1603_v35 = vand.u32 4294901760, %v1188_v12  ;;  %v1606_v52 = vsub.f32 %v1186_v24, %v1601_v53  ;;  %415 = vmatprep.mubr.f32.mxu1 %v1601_v53  ;;  %v1894_v24 = vld [vmem:[#allocation12_spill] sm:$0xff] }
  0x5f   :  { %1889 = vst [vmem:[#allocation30_spill] sm:$0xff] %v1603_v35  ;;  %v1610_v45 = vsub.f32 %v1188_v12, %v1603_v35  ;;  %417 = vmatmul.mubr.f32.vlgmr.msra.gmra.mxu1 %v1603_v35  ;;  %v176_v32 = vand.u32 4294901760, %v1606_v52  ;;  %v1895_v12 = vld [vmem:[#allocation13_spill] sm:$0xff]  ;;  %v1904_v35 = vld [vmem:[#allocation23_spill] sm:$0xff] }
  0x60   :  { %1071 = vmatpush3.msra.mxu1 %v1268_v4 }
  0x61   :  { %v1854_v38 = vand.u32 4294901760, %v1610_v45  ;;  %1072 = vmatprep.subr.mxu1 %v1270_v5  ;;  %v177_v49 = vsub.f32 %v1606_v52, %v176_v32  ;;  %659 = vmatprep.mubr.f32.mxu1 %v176_v32  ;;  %v1896_v32 = vld [vmem:[#allocation19_spill] sm:$0xff]  ;;  %v1905_v53 = vand.u32 4294901760, %v1610_v45 }
  0x62   :  { %1073 = vmatpush3.msra.mxu1 %v1272_v9 }
  0x63   :  { %v183_v27 = vsub.f32 %v1610_v45, %v1854_v38  ;;  %1074 = vmatprep.subr.mxu1 %v1274_v10  ;;  %v178_v42 = vand.u32 4294901760, %v177_v49  ;;  %v1897_v49 = vld [vmem:[#allocation14_spill] sm:$0xff]  ;;  %v1902_v38 = vld [vmem:[#allocation21_spill] sm:$0xff] }
  0x64   :  { %1075 = vmatpush3.msra.mxu1 %v1276_v11 }
  0x65   :  { %v184_v34 = vand.u32 4294901760, %v183_v27  ;;  %1076 = vmatprep.subr.mxu1 %v1288_v17  ;;  %179 = vmatprep.mubr.f32.mxu0 %v178_v42  ;;  %v1898_v27 = vld [vmem:[#allocation15_spill] sm:$0xff]  ;;  %v1899_v42 = vld [vmem:[#allocation20_spill] sm:$0xff] }
  0x66   :  { %1077 = vmatpush3.msra.mxu1 %v1300_v21 }
  0x67   :  { %185 = vmatmul.mubr.f32.vlgmr.msra.gmra.mxu0 %v184_v34  ;;  %1078 = vmatprep.subr.mxu1 %v1346_v54  ;;  %v1900_v34 = vld [vmem:[#allocation17_spill] sm:$0xff] }
  0x68   :  { %1036 = vmatpush3.msra.mxu0 %v1283_v15  ;;  %1079 = vmatpush3.msra.mxu1 %v1348_v55 }
  0x69   :  { %1037 = vmatprep.subr.mxu0 %v1286_v16  ;;  %1080 = vmatprep.subr.mxu1 %v1350_v56 }
  0x6a   :  { %1038 = vmatpush3.msra.mxu0 %v1292_v18  ;;  %1081 = vmatpush3.msra.mxu1 %v1352_v59 }
  0x6b   :  { %1039 = vmatprep.subr.mxu0 %v1295_v19  ;;  %1082 = vmatprep.subr.mxu1 %v1354_v60 }
  0x6c   :  { %1040 = vmatpush3.msra.mxu0 %v1298_v20  ;;  %1083 = vmatpush3.msra.mxu1 %v1356_v61 }
  0x6d   :  { %1041 = vmatprep.subr.mxu0 %v1307_v25  ;;  %1084 = vmatprep.subr.mxu1 %v1368_v1 }
  0x6e   :  { %1042 = vmatpush3.msra.mxu0 %v1314_v29  ;;  %1085 = vmatpush3.msra.mxu1 %v1380_v8 }
  0x6f   :  { %1043 = vmatprep.subr.mxu0 %v1360_v62  ;;  %1086 = vmatprep.subr.mxu1 %v1426_v30 }
  0x70   :  { %1044 = vmatpush3.msra.mxu0 %v1363_v63  ;;  %1087 = vmatpush3.msra.mxu1 %v1428_v13 }
  0x71   :  { %1045 = vmatprep.subr.mxu0 %v1366_v0  ;;  %1088 = vmatprep.subr.mxu1 %v1430_v41 }
  0x72   :  { %1046 = vmatpush3.msra.mxu0 %v1372_v2  ;;  %1089 = vmatpush3.msra.mxu1 %v1432_v43 }
  0x73   :  { %1047 = vmatprep.subr.mxu0 %v1375_v6  ;;  %1090 = vmatprep.subr.mxu1 %v1434_v44 }
  0x74   :  { %1048 = vmatpush3.msra.mxu0 %v1378_v7  ;;  %1091 = vmatpush3.msra.mxu1 %v1436_v37 }
  0x75   :  { %1049 = vmatprep.subr.mxu0 %v1387_v31  ;;  %1092 = vmatprep.subr.mxu1 %v1448_v50 }
  0x76   :  { %1050 = vmatpush3.msra.mxu0 %v1890_v33  ;;  %1093 = vmatpush3.msra.mxu1 %v1891_v26 }
  0x77   :  { %1051 = vmatprep.subr.mxu0 %v1892_v47  ;;  %1094 = vmatprep.subr.mxu1 %v1506_v46 }
  0x78   :  { %1052 = vmatpush3.msra.mxu0 %v1893_v58  ;;  %1095 = vmatpush3.msra.mxu1 %v1508_v36 }
  0x79   :  { %1053 = vmatprep.subr.mxu0 %v1894_v24  ;;  %1096 = vmatprep.subr.mxu1 %v1510_v57 }
  0x7a   :  { %1054 = vmatpush3.msra.mxu0 %v1895_v12  ;;  %1097 = vmatpush3.msra.mxu1 %v1896_v32 }
  0x7b   :  { %1055 = vmatprep.subr.mxu0 %v1897_v49  ;;  %1098 = vmatprep.subr.mxu1 %v1514_v48 }
  0x7c   :  { %1056 = vmatpush3.msra.mxu0 %v1898_v27  ;;  %1099 = vmatpush3.msra.mxu1 %v1899_v42  ;;  %v1906_v42 = vld [vmem:[#allocation25_spill] sm:$0xff] }
  0x7d   :  { %1057 = vmatprep.subr.mxu0 %v1900_v34  ;;  %1100 = vmatprep.subr.mxu1 %v1528_v22  ;;  %v1907_v22 = vld [vmem:[#allocation26_spill] sm:$0xff] }
  0x7e   :  { %1058 = vmatpush3.msra.mxu0 %v1901_v40  ;;  %552 = vmatprep.mubr.f32.mxu0 %v1606_v52  ;;  %v1908_v52 = vld [vmem:[#allocation27_spill] sm:$0xff] }
  0x7f   :  { %1059 = vmatprep.subr.mxu0 %v1902_v38  ;;  %1101 = vmatpush3.msra.mxu1 %v1540_v28 }
  0x80   :  { %1060 = vmatpush3.msra.mxu0 %v1903_v39  ;;  %1140 = vmatprep.subr.mxu1 %v1266_v3  ;;  %v1909_v3 = vand.u32 4294901760, %v1280_v14  ;;  %v1915_v14 = vand.u32 4294901760, %v1307_v25  ;;  %v1923_v25 = vand.u32 4294901760, %v1387_v31  ;;  %v1942_v31 = vld [vmem:[#allocation30_spill] sm:$0xff] }
  0x81   :  { %1061 = vmatprep.subr.mxu0 %v1904_v35  ;;  %663 = vmatmul.mubr.f32.vlgmr.msra.gmra.mxu1 %v1905_v53 }
  0x82   :  { %1062 = vmatpush3.msra.mxu0 %v1906_v42  ;;  %1141 = vmatpush3.msra.mxu1 %v1268_v4  ;;  %v1910_v4 = vand.u32 4294901760, %v1283_v15  ;;  %v1916_v15 = vand.u32 4294901760, %v1314_v29  ;;  %v1924_v29 = vand.u32 4294901760, %v1890_v33 }
  0x83   :  { %1063 = vmatprep.subr.mxu0 %v1907_v22  ;;  %1142 = vmatprep.subr.mxu1 %v1270_v5  ;;  %v1911_v5 = vand.u32 4294901760, %v1286_v16  ;;  %v1917_v16 = vand.u32 4294901760, %v1360_v62  ;;  %v1932_v62 = vand.u32 4294901760, %v1901_v40 }
  0x84   :  { %1064 = vmatpush3.msra.mxu0 %v1908_v52  ;;  %1143 = vmatpush3.msra.mxu1 %v1272_v9  ;;  %v1912_v9 = vand.u32 4294901760, %v1292_v18  ;;  %v1919_v18 = vand.u32 4294901760, %v1366_v0  ;;  %v1934_v0 = vld [vmem:[#allocation20_spill] sm:$0xff] }
  0x85   :  { %1065 = vmatprep.subr.mxu0 %v1547_v51  ;;  %1144 = vmatprep.subr.mxu1 %v1274_v10  ;;  %v1913_v10 = vand.u32 4294901760, %v1295_v19  ;;  %v1920_v19 = vand.u32 4294901760, %v1372_v2  ;;  %v1936_v2 = vld [vmem:[#allocation24_spill] sm:$0xff] }
  0x86   :  { %1066 = vmatpush3.msra.mxu0 %v1554_v23  ;;  %1145 = vmatpush3.msra.mxu1 %v1276_v11  ;;  %v1914_v11 = vand.u32 4294901760, %v1298_v20  ;;  %v1921_v20 = vand.u32 4294901760, %v1375_v6  ;;  %v1937_v6 = vand.u32 4294901760, %v1904_v35 }
  0x87   :  { %555 = vmatmul.mubr.f32.vlgmr.msra.gmra.mxu0 %v1610_v45  ;;  %1105 = vmatprep.subr.mxu0 %v1909_v3 }
  0x88   :  { %1106 = vmatpush3.msra.mxu0 %v1910_v4  ;;  %1146 = vmatprep.subr.mxu1 %v1288_v17  ;;  %v1918_v17 = vand.u32 4294901760, %v1363_v63  ;;  %v1933_v63 = vand.u32 4294901760, %v1902_v38 }
  0x89   :  { %1107 = vmatprep.subr.mxu0 %v1911_v5  ;;  %1147 = vmatpush3.msra.mxu1 %v1300_v21  ;;  %v1922_v21 = vand.u32 4294901760, %v1378_v7  ;;  %v1938_v7 = vld [vmem:[#allocation29_spill] sm:$0xff] }
  0x8a   :  { %1108 = vmatpush3.msra.mxu0 %v1912_v9  ;;  %1148 = vmatprep.subr.mxu1 %v1346_v54  ;;  %v1925_v54 = vand.u32 4294901760, %v1892_v47 }
  0x8b   :  { %1109 = vmatprep.subr.mxu0 %v1913_v10  ;;  %1149 = vmatpush3.msra.mxu1 %v1348_v55  ;;  %v1926_v55 = vand.u32 4294901760, %v1893_v58 }
  0x8c   :  { %1110 = vmatpush3.msra.mxu0 %v1914_v11  ;;  %1150 = vmatprep.subr.mxu1 %v1350_v56  ;;  %v1927_v56 = vand.u32 4294901760, %v1894_v24 }
  0x8d   :  { %1111 = vmatprep.subr.mxu0 %v1915_v14  ;;  %1151 = vmatpush3.msra.mxu1 %v1352_v59  ;;  %v1928_v59 = vand.u32 4294901760, %v1895_v12 }
  0x8e   :  { %1112 = vmatpush3.msra.mxu0 %v1916_v15  ;;  %1152 = vmatprep.subr.mxu1 %v1354_v60  ;;  %v1929_v60 = vand.u32 4294901760, %v1897_v49 }
  0x8f   :  { %1113 = vmatprep.subr.mxu0 %v1917_v16  ;;  %1153 = vmatpush3.msra.mxu1 %v1356_v61  ;;  %v1931_v61 = vand.u32 4294901760, %v1900_v34 }
  0x90   :  { %1114 = vmatpush3.msra.mxu0 %v1918_v17  ;;  %1154 = vmatprep.subr.mxu1 %v1368_v1  ;;  %v1935_v1 = vand.u32 4294901760, %v1903_v39 }
  0x91   :  { %1115 = vmatprep.subr.mxu0 %v1919_v18  ;;  %1155 = vmatpush3.msra.mxu1 %v1380_v8  ;;  %v1939_v8 = vand.u32 4294901760, %v1906_v42 }
  0x92   :  { %1116 = vmatpush3.msra.mxu0 %v1920_v19  ;;  %1156 = vmatprep.subr.mxu1 %v1426_v30  ;;  %v1941_v30 = vand.u32 4294901760, %v1908_v52 }
  0x93   :  { %1117 = vmatprep.subr.mxu0 %v1921_v20  ;;  %1157 = vmatpush3.msra.mxu1 %v1428_v13  ;;  %v1940_v13 = vand.u32 4294901760, %v1907_v22 }
  0x94   :  { %1118 = vmatpush3.msra.mxu0 %v1922_v21  ;;  %1158 = vmatprep.subr.mxu1 %v1430_v41  ;;  %v1944_v41 = vand.u32 4294901760, %v1554_v23 }
  0x95   :  { %1119 = vmatprep.subr.mxu0 %v1923_v25  ;;  %1159 = vmatpush3.msra.mxu1 %v1432_v43  ;;  %v1945_v43 = vld [vmem:[#allocation28_spill] sm:$0xff] }
  0x96   :  { %1120 = vmatpush3.msra.mxu0 %v1924_v29  ;;  %1160 = vmatprep.subr.mxu1 %v1434_v44  ;;  %1189 = vrcp.f32 %v1945_v43 }
  0x97   :  { %1121 = vmatprep.subr.mxu0 %v1925_v54  ;;  %1161 = vmatpush3.msra.mxu1 %v1436_v37  ;;  %v1930_v37 = vand.u32 4294901760, %v1898_v27 }
  0x98   :  { %1122 = vmatpush3.msra.mxu0 %v1926_v55  ;;  %1162 = vmatprep.subr.mxu1 %v1448_v50 }
  0x99   :  { %1123 = vmatprep.subr.mxu0 %v1927_v56  ;;  %1163 = vmatpush3.msra.mxu1 %v1891_v26 }
  0x9a   :  { %1124 = vmatpush3.msra.mxu0 %v1928_v59  ;;  %1164 = vmatprep.subr.mxu1 %v1506_v46 }
  0x9b   :  { %1125 = vmatprep.subr.mxu0 %v1929_v60  ;;  %1165 = vmatpush3.msra.mxu1 %v1508_v36  ;;  %v1943_v36 = vand.u32 4294901760, %v1547_v51 }
  0x9c   :  { %1126 = vmatpush3.msra.mxu0 %v1930_v37  ;;  %1166 = vmatprep.subr.mxu1 %v1510_v57 }
  0x9d   :  { %1127 = vmatprep.subr.mxu0 %v1931_v61  ;;  %1167 = vmatpush3.msra.mxu1 %v1896_v32 }
  0x9e   :  { %1128 = vmatpush3.msra.mxu0 %v1932_v62  ;;  %1168 = vmatprep.subr.mxu1 %v1514_v48 }
  0x9f   :  { %1129 = vmatprep.subr.mxu0 %v1933_v63  ;;  %1169 = vmatpush3.msra.mxu1 %v1934_v0 }
  0xa0   :  { %1130 = vmatpush3.msra.mxu0 %v1935_v1  ;;  %1170 = vmatprep.subr.mxu1 %v1936_v2 }
  0xa1   :  { %1131 = vmatprep.subr.mxu0 %v1937_v6  ;;  %829 = vmatprep.mubr.f32.mxu0 %v1938_v7 }
  0xa2   :  { %1132 = vmatpush3.msra.mxu0 %v1939_v8  ;;  %1171 = vmatpush3.msra.mxu1 %v1540_v28 }
  0xa3   :  { %1133 = vmatprep.subr.mxu0 %v1940_v13  ;;  %933 = vmatprep.mubr.f32.mxu1 %v1938_v7  ;;  %v1190_v28 = vpop.eup %1189 }
  0xa4   :  { %1134 = vmatpush3.msra.mxu0 %v1941_v30  ;;  %935 = vmatmul.mubr.f32.vlgmr.msra.gmra.mxu1 %v1942_v31  ;;  %1175 = vpush %v1190_v28 }
  0xa5   :  { %1135 = vmatprep.subr.mxu0 %v1943_v36 }
  0xa6   :  { %1136 = vmatpush3.msra.mxu0 %v1944_v41 }
  0xa7   :  { %831 = vmatmul.mubr.f32.vlgmr.msra.gmra.mxu0 %v1942_v31 }
  0xd5   :  { %s1176_s0 = spop %1175 }
  0xd6   :  { %v945_v34 = vstv %s1176_s0 }
 0x11f   :  { %v1032_v50 = vpop.f32.mrf.mxu1 }
 0x121   :  { %v1033_v48 = vpop.f32.mrf.mxu1 }
 0x122   :  { %v1034_v53 = vadd.f32 %v1033_v48, %v1032_v50 }
 0x127   :  { %v997_v44 = vpop.f32.mrf.mxu0 }
 0x129   :  { %v998_v46 = vpop.f32.mrf.mxu0 }
 0x12a   :  { %v999_v39 = vadd.f32 %v998_v46, %v997_v44 }
 0x12c   :  { %v419_v45 = vadd.f32 %v1034_v53, %v999_v39 }
 0x141   :  { %v1102_v22 = vpop.f32.mrf.mxu1 }
 0x143   :  { %v1103_v35 = vpop.f32.mrf.mxu1 }
 0x144   :  { %v1104_v33 = vadd.f32 %v1103_v35, %v1102_v22 }
 0x147   :  { %v1067_v57 = vpop.f32.mrf.mxu0 }
 0x149   :  { %v1068_v40 = vpop.f32.mrf.mxu0 }
 0x14a   :  { %v1069_v51 = vadd.f32 %v1068_v40, %v1067_v57 }
 0x14c   :  { %v557_v38 = vadd.f32 %v1069_v51, %v419_v45 }
 0x14e   :  { %v665_v24 = vadd.f32 %v1104_v33, %v557_v38 }
 0x164   :  { %v1172_v23 = vpop.f32.mrf.mxu1 }
 0x166   :  { %v1173_v58 = vpop.f32.mrf.mxu1 }
 0x167   :  { %v1137_v26 = vpop.f32.mrf.mxu0  ;;  %v1174_v49 = vadd.f32 %v1173_v58, %v1172_v23 }
 0x169   :  { %v1138_v47 = vpop.f32.mrf.mxu0 }
 0x16a   :  { %v1139_v12 = vadd.f32 %v1138_v47, %v1137_v26 }
 0x16c   :  { %v833_v32 = vadd.f32 %v1139_v12, %v665_v24 }
 0x16e   :  { %v937_v27 = vadd.f32 %v1174_v49, %v833_v32 }
 0x170   :  { %1191 = vlog2.f32 %v937_v27 }
 0x17d   :  { %v1192_v42 = vpop.eup %1191 }
 0x17e   :  { %v944_v52 = vmul.f32 0.6931472, %v1192_v42 }
 0x180   :  { %v946_v3 = vmul.f32 %v945_v34, %v944_v52 }
 0x182   :  { %v947_v4 = vmul.f32 1.442695, %v946_v3 }
 0x184   :  { %1193 = vpow2.f32 %v947_v4 }
 0x191   :  { %v1194_v5 = vpop.eup %1193 }
 0x192   :  { %949 = vst [vmem:[#allocation6] sm:$0xff] %v1194_v5 }
 0x193   :  { %1226 = shalt.err (!%p1223_p9)
}
 0x194   :  { %959 = dma.vmem_to_hbm [thread:$0]  %s957_s24, 128, %s1792_s3, [#allocation5]  }
 0x195   :  { %1237 = dma.done.wait [#allocation5], 128  }
 0x196   :  { %1238 = vsyncadd [#allocation5], 4294967168 }
 0x197   :  { %963 = vsyncpa [#allocation4], 1 }
 0x198   :  { %964 = vsyncpa [#allocation5], 1 }

</bundles_post_ra>
